<compile_context>
chip_gen: v5e
topology: v5e:2x2
jax: 0.10.0
libtpu: 0.0.40
codegen_flags: <defaults>
</compile_context>

<pallas_src>
import math
from functools import partial

import jax
import jax.numpy as jnp
from jax.experimental import pallas as pl
from jax.experimental.pallas import tpu as pltpu

LN_EPS = 1e-5


def _gelu(x):
    # exact erf-based gelu, matching the reference implementation
    return x * 0.5 * (1.0 + jax.lax.erf(x / math.sqrt(2.0)))


def lm_head_kernel(x_ref, wt_ref, vec_ref, wdec_ref, bdec_ref, out_ref, h_ref,
                   *, mm_dtype):
    # grid = (row tiles, vocab tiles); vocab innermost.
    j = pl.program_id(1)

    # ---- transform (dense + gelu + LayerNorm): once per row tile, cached in VMEM ----
    @pl.when(j == 0)
    def _():
        b_t   = vec_ref[0:1, :]            # [1, H] f32
        gamma = vec_ref[1:2, :]            # [1, H] f32
        beta  = vec_ref[2:3, :]            # [1, H] f32
        x = x_ref[...]                     # [tm, H] mm_dtype
        # x @ W_t.T  (PyTorch [out, in] layout -> contract last dims), f32 accumulation
        h = jax.lax.dot_general(
            x, wt_ref[...],
            dimension_numbers=(((1,), (1,)), ((), ())),
            preferred_element_type=jnp.float32) + b_t
        h = _gelu(h)
        mu = jnp.mean(h, axis=-1, keepdims=True)
        var = jnp.mean((h - mu) ** 2, axis=-1, keepdims=True)
        h_ref[...] = gamma * (h - mu) * jax.lax.rsqrt(var + LN_EPS) + beta

    # ---- decoder: [tm, H] @ [tv, H].T + bias, streamed over vocab tiles ----
    h = h_ref[...]                         # [tm, H] f32 (LN result)
    logits = jax.lax.dot_general(
        h.astype(mm_dtype), wdec_ref[...],
        dimension_numbers=(((1,), (1,)), ((), ())),
        preferred_element_type=jnp.float32) + bdec_ref[...]
    out_ref[...] = logits.astype(out_ref.dtype)   # lane-dense [tm, tv] store


def bert_lm_prediction_head(hidden_states, params, *, tm=None, tv=None,
                            matmul_dtype=None):
    """hidden_states: [B, S, H].
    params (PyTorch layouts):
      wt [H, H] (nn.Linear weight, [out, in]), bt [H], gamma [H], beta [H],
      w_emb [V, H] (tied embedding table = decoder weight), dec_bias [V]."""
    B, S, H = hidden_states.shape
    V = params["w_emb"].shape[0]
    N = B * S
    out_dtype = hidden_states.dtype
    mm_dtype = jnp.dtype(matmul_dtype) if matmul_dtype is not None else jnp.dtype(out_dtype)

    # --- tile sizes: row tiles multiple of 8, vocab tiles multiple of 128 ---
    if tm is None:
        tm = N if N <= 128 else 128
    if tv is None:
        tv = V if V <= 512 else 512
    assert N % tm == 0 and (tm % 8 == 0 or tm == N), "bad row tile"
    assert V % tv == 0 and tv % 128 == 0, "bad vocab tile"
    n_rt, n_vt = N // tm, V // tv

    x2d = hidden_states.reshape(N, H).astype(mm_dtype)
    wt = params["wt"].astype(mm_dtype)                    # [H, H]  (out, in)
    wdec = params["w_emb"].astype(mm_dtype)               # [V, H]  (out, in) -- no transpose
    # Pack the three [H] f32 vectors into one [3, H] slab -> one DMA pipeline.
    vecs = jnp.stack([params["bt"], params["gamma"], params["beta"]],
                     axis=0).astype(jnp.float32)
    bdec = params["dec_bias"].reshape(1, V).astype(jnp.float32)

    mm_bytes = mm_dtype.itemsize
    cost = pl.CostEstimate(
        flops=2 * N * H * H + 2 * N * H * V + 12 * N * H,
        transcendentals=N * H + N,
        bytes_accessed=(N * H * mm_bytes + H * H * mm_bytes + 3 * H * 4
                        + V * H * mm_bytes + V * 4 + N * V * jnp.dtype(out_dtype).itemsize),
    )

    # VMEM budget: 2x-buffered streamed tiles + resident transform weights + scratch.
    per_step = (2 * (tm * H * mm_bytes + tv * H * mm_bytes + tv * 4
                     + tm * tv * jnp.dtype(out_dtype).itemsize)
                + H * H * mm_bytes + 3 * H * 4 + tm * H * 4)
    vmem_limit = int(min(max(4 * per_step, 32 * 1024 * 1024), 64 * 1024 * 1024))

    out = pl.pallas_call(
        partial(lm_head_kernel, mm_dtype=mm_dtype),
        out_shape=jax.ShapeDtypeStruct((N, V), out_dtype),
        grid_spec=pltpu.PrefetchScalarGridSpec(
            num_scalar_prefetch=0,
            grid=(n_rt, n_vt),                                     # vocab innermost
            in_specs=[
                pl.BlockSpec((tm, H), lambda i, j: (i, 0)),        # hidden states
                pl.BlockSpec((H, H),  lambda i, j: (0, 0)),        # transform dense W
                pl.BlockSpec((3, H),  lambda i, j: (0, 0)),        # [b_t; gamma; beta]
                pl.BlockSpec((tv, H), lambda i, j: (j, 0)),        # decoder weight stream
                pl.BlockSpec((1, tv), lambda i, j: (0, j)),        # decoder bias stream
            ],
            out_specs=pl.BlockSpec((tm, tv), lambda i, j: (i, j)), # lane-dense logits
            scratch_shapes=[pltpu.VMEM((tm, H), jnp.float32)],     # cached LN(gelu(...))
        ),
        compiler_params=pltpu.CompilerParams(
            dimension_semantics=("parallel", "arbitrary"),
            vmem_limit_bytes=vmem_limit),
        cost_estimate=cost,
    )(x2d, wt, vecs, wdec, bdec)
    return out.reshape(B, S, V)


# ---- pure-JAX reference (PyTorch layout: Linear does x @ W.T) ----
def lm_head_ref(x, p):
    h = x @ p["wt"].T + p["bt"]
    h = h * 0.5 * (1.0 + jax.lax.erf(h / math.sqrt(2.0)))
    mu = jnp.mean(h, axis=-1, keepdims=True)
    var = jnp.mean((h - mu) ** 2, axis=-1, keepdims=True)
    h = p["gamma"] * (h - mu) / jnp.sqrt(var + LN_EPS) + p["beta"]
    return h @ p["w_emb"].T + p["dec_bias"]


if __name__ == "__main__":
    # small shapes consistent with the module
    B, S, H, V = 2, 8, 32, 512

    key = jax.random.PRNGKey(0)
    keys = jax.random.split(key, 6)

    def w(k, shape, scale=0.05):
        return (scale * jax.random.normal(k, shape)).astype(jnp.float32)

    params = {
        "wt": w(keys[0], (H, H)),            # nn.Linear weight, [out, in]
        "bt": w(keys[1], (H,)),
        "gamma": jnp.ones((H,), jnp.float32),
        "beta": jnp.zeros((H,), jnp.float32),
        "w_emb": w(keys[2], (V, H)),         # tied embedding table, [vocab, hidden]
        "dec_bias": w(keys[3], (V,)),
    }

    x = jax.random.normal(keys[4], (B, S, H), jnp.float32)
    ref = lm_head_ref(x, params)

    # f32 path: exercises the 2-D (row, vocab) grid + per-row-tile scratch reuse.
    out = bert_lm_prediction_head(x, params, tm=8, tv=128)
    out = jax.block_until_ready(out)
    assert out.shape == (B, S, V)
    assert jnp.allclose(out, ref, atol=1e-4, rtol=1e-4), "f32 mismatch vs reference"

    # bf16 matmul-operand path (f32 accumulation / LayerNorm / biases): looser tolerance.
    out_bf16 = bert_lm_prediction_head(x, params, tm=8, tv=128,
                                       matmul_dtype=jnp.bfloat16)
    out_bf16 = jax.block_until_ready(out_bf16)
    assert jnp.allclose(out_bf16, ref, atol=5e-2, rtol=5e-2), "bf16 mismatch vs reference"

    print("KERNEL_OK")
</pallas_src>

<mosaic_0001>
module attributes {stable_mosaic.version = 11 : i64} {
  func.func @lm_head_kernel(%arg0: i32, %arg1: i32, %arg2: memref<8x32xf32, #tpu.memory_space<vmem>>, %arg3: memref<32x32xf32, #tpu.memory_space<vmem>>, %arg4: memref<3x32xf32, #tpu.memory_space<vmem>>, %arg5: memref<128x32xf32, #tpu.memory_space<vmem>>, %arg6: memref<1x128xf32, #tpu.memory_space<vmem>>, %arg7: memref<8x128xf32, #tpu.memory_space<vmem>>, %arg8: memref<8x32xf32, #tpu.memory_space<vmem>>) attributes {dimension_semantics = [#tpu.dimension_semantics<parallel>, #tpu.dimension_semantics<arbitrary>], iteration_bounds = array<i64: 2, 4>, scalar_prefetch = 0 : i64, scratch_operands = 1 : i64, tpu.core_type = #tpu.core_type<tc>, window_params = [{transform_indices = @transform_0, window_bounds = array<i64: 8, 32>}, {pipeline_mode = #tpu.pipeline_mode<synchronous>, transform_indices = @transform_1, window_bounds = array<i64: 32, 32>}, {pipeline_mode = #tpu.pipeline_mode<synchronous>, transform_indices = @transform_2, window_bounds = array<i64: 3, 32>}, {transform_indices = @transform_3, window_bounds = array<i64: 128, 32>}, {transform_indices = @transform_4, window_bounds = array<i64: 1, 128>}, {transform_indices = @transform_5, window_bounds = array<i64: 8, 128>}]} {
    %c0_i32 = arith.constant 0 : i32
    %0 = arith.cmpi eq, %arg1, %c0_i32 : i32
    %1 = arith.extui %0 : i1 to i32
    %c0_i32_0 = arith.constant 0 : i32
    %2 = arith.cmpi ne, %1, %c0_i32_0 : i32
    scf.if %2 {
      %c0_8 = arith.constant 0 : index
      %c0_9 = arith.constant 0 : index
      %10 = vector.load %arg4[%c0_8, %c0_9] : memref<3x32xf32, #tpu.memory_space<vmem>>, vector<1x32xf32>
      %c1 = arith.constant 1 : index
      %c0_10 = arith.constant 0 : index
      %11 = vector.load %arg4[%c1, %c0_10] : memref<3x32xf32, #tpu.memory_space<vmem>>, vector<1x32xf32>
      %c2 = arith.constant 2 : index
      %c0_11 = arith.constant 0 : index
      %12 = vector.load %arg4[%c2, %c0_11] : memref<3x32xf32, #tpu.memory_space<vmem>>, vector<1x32xf32>
      %c0_12 = arith.constant 0 : index
      %c0_13 = arith.constant 0 : index
      %13 = vector.load %arg2[%c0_12, %c0_13] : memref<8x32xf32, #tpu.memory_space<vmem>>, vector<8x32xf32>
      %c0_14 = arith.constant 0 : index
      %c0_15 = arith.constant 0 : index
      %14 = vector.load %arg3[%c0_14, %c0_15] : memref<32x32xf32, #tpu.memory_space<vmem>>, vector<32x32xf32>
      %cst_16 = arith.constant dense<0.000000e+00> : vector<8x32xf32>
      %15 = tpu.matmul %13, %14, %cst_16 {dimension_numbers = #tpu.dot_dimension_numbers<[1], [1], [0], [0], [0, 0, 1, 0], [], []>} : vector<8x32xf32>, vector<32x32xf32>, vector<8x32xf32> -> vector<8x32xf32>
      %16 = vector.broadcast %10 : vector<1x32xf32> to vector<8x32xf32>
      %17 = arith.addf %15, %16 : vector<8x32xf32>
      %cst_17 = arith.constant 5.000000e-01 : f32
      %18 = vector.broadcast %cst_17 : f32 to vector<8x32xf32>
      %19 = arith.mulf %17, %18 : vector<8x32xf32>
      %cst_18 = arith.constant 1.41421354 : f32
      %20 = vector.broadcast %cst_18 : f32 to vector<8x32xf32>
      %21 = arith.divf %17, %20 : vector<8x32xf32>
      %22 = math.erf %21 : vector<8x32xf32>
      %cst_19 = arith.constant 1.000000e+00 : f32
      %23 = vector.broadcast %cst_19 : f32 to vector<8x32xf32>
      %24 = arith.addf %23, %22 : vector<8x32xf32>
      %25 = arith.mulf %19, %24 : vector<8x32xf32>
      %cst_20 = arith.constant dense<0.000000e+00> : vector<8xf32>
      %26 = vector.multi_reduction <add>, %25, %cst_20 [1] : vector<8x32xf32> to vector<8xf32>
      %27 = vector.shape_cast %26 : vector<8xf32> to vector<8x1xf32>
      %cst_21 = arith.constant 3.200000e+01 : f32
      %28 = vector.broadcast %cst_21 : f32 to vector<8x1xf32>
      %29 = arith.divf %27, %28 : vector<8x1xf32>
      %30 = vector.broadcast %29 : vector<8x1xf32> to vector<8x32xf32>
      %31 = arith.subf %25, %30 : vector<8x32xf32>
      %32 = arith.mulf %31, %31 : vector<8x32xf32>
      %cst_22 = arith.constant dense<0.000000e+00> : vector<8xf32>
      %33 = vector.multi_reduction <add>, %32, %cst_22 [1] : vector<8x32xf32> to vector<8xf32>
      %34 = vector.shape_cast %33 : vector<8xf32> to vector<8x1xf32>
      %cst_23 = arith.constant 3.200000e+01 : f32
      %35 = vector.broadcast %cst_23 : f32 to vector<8x1xf32>
      %36 = arith.divf %34, %35 : vector<8x1xf32>
      %37 = vector.broadcast %29 : vector<8x1xf32> to vector<8x32xf32>
      %38 = arith.subf %25, %37 : vector<8x32xf32>
      %39 = vector.broadcast %11 : vector<1x32xf32> to vector<8x32xf32>
      %40 = arith.mulf %39, %38 : vector<8x32xf32>
      %cst_24 = arith.constant 9.99999974E-6 : f32
      %41 = vector.broadcast %cst_24 : f32 to vector<8x1xf32>
      %42 = arith.addf %36, %41 : vector<8x1xf32>
      %43 = math.rsqrt %42 : vector<8x1xf32>
      %44 = vector.broadcast %43 : vector<8x1xf32> to vector<8x32xf32>
      %45 = arith.mulf %40, %44 : vector<8x32xf32>
      %46 = vector.broadcast %12 : vector<1x32xf32> to vector<8x32xf32>
      %47 = arith.addf %45, %46 : vector<8x32xf32>
      %c0_25 = arith.constant 0 : index
      %c0_26 = arith.constant 0 : index
      %48 = vector.load %arg8[%c0_25, %c0_26] : memref<8x32xf32, #tpu.memory_space<vmem>>, vector<8x32xf32>
      tpu.vector_store %arg8[%c0_25, %c0_26], %47 {strides = array<i32>} : memref<8x32xf32, #tpu.memory_space<vmem>>, vector<8x32xf32>,
    } else {
    }
    %c0 = arith.constant 0 : index
    %c0_1 = arith.constant 0 : index
    %3 = vector.load %arg8[%c0, %c0_1] : memref<8x32xf32, #tpu.memory_space<vmem>>, vector<8x32xf32>
    %c0_2 = arith.constant 0 : index
    %c0_3 = arith.constant 0 : index
    %4 = vector.load %arg5[%c0_2, %c0_3] : memref<128x32xf32, #tpu.memory_space<vmem>>, vector<128x32xf32>
    %cst = arith.constant dense<0.000000e+00> : vector<8x128xf32>
    %5 = tpu.matmul %3, %4, %cst {dimension_numbers = #tpu.dot_dimension_numbers<[1], [1], [0], [0], [0, 0, 1, 0], [], []>} : vector<8x32xf32>, vector<128x32xf32>, vector<8x128xf32> -> vector<8x128xf32>
    %c0_4 = arith.constant 0 : index
    %c0_5 = arith.constant 0 : index
    %6 = vector.load %arg6[%c0_4, %c0_5] : memref<1x128xf32, #tpu.memory_space<vmem>>, vector<1x128xf32>
    %7 = vector.broadcast %6 : vector<1x128xf32> to vector<8x128xf32>
    %8 = arith.addf %5, %7 : vector<8x128xf32>
    %c0_6 = arith.constant 0 : index
    %c0_7 = arith.constant 0 : index
    %9 = vector.load %arg7[%c0_6, %c0_7] : memref<8x128xf32, #tpu.memory_space<vmem>>, vector<8x128xf32>
    tpu.vector_store %arg7[%c0_6, %c0_7], %8 {strides = array<i32>} : memref<8x128xf32, #tpu.memory_space<vmem>>, vector<8x128xf32>,
    return
  }
  func.func @transform_0(%arg0: i32, %arg1: i32) -> (i32, i32) {
    %c0_i32 = arith.constant 0 : i32
    %c0_i32_0 = arith.constant 0 : i32
    return %arg0, %c0_i32 : i32, i32
  }
  func.func @transform_1(%arg0: i32, %arg1: i32) -> (i32, i32) {
    %c0_i32 = arith.constant 0 : i32
    %c0_i32_0 = arith.constant 0 : i32
    %c0_i32_1 = arith.constant 0 : i32
    return %c0_i32, %c0_i32_0 : i32, i32
  }
  func.func @transform_2(%arg0: i32, %arg1: i32) -> (i32, i32) {
    %c0_i32 = arith.constant 0 : i32
    %c0_i32_0 = arith.constant 0 : i32
    %c0_i32_1 = arith.constant 0 : i32
    return %c0_i32, %c0_i32_0 : i32, i32
  }
  func.func @transform_3(%arg0: i32, %arg1: i32) -> (i32, i32) {
    %c0_i32 = arith.constant 0 : i32
    %c0_i32_0 = arith.constant 0 : i32
    return %arg1, %c0_i32 : i32, i32
  }
  func.func @transform_4(%arg0: i32, %arg1: i32) -> (i32, i32) {
    %c0_i32 = arith.constant 0 : i32
    %c0_i32_0 = arith.constant 0 : i32
    return %c0_i32, %arg1 : i32, i32
  }
  func.func @transform_5(%arg0: i32, %arg1: i32) -> (i32, i32) {
    %c0_i32 = arith.constant 0 : i32
    return %arg0, %arg1 : i32, i32
  }
}

</mosaic_0001>

<bundles_post_ra>
// kernel: tpu_custom_call.1
= control target key start
LH: loop header
LB: loop body
LE: loop exit
PB: predicated region body
PF: predicated region fallthrough
CT: control target
= control target key end

     0   :  { %10 = vsyncpa [#allocation4], 0  ;;  %s1073_s0 = inlined_call_operand.vmem [shape: f32[16,32], index: 0, kind: input, shape index: {}]   ;;  %s1074_s1 = inlined_call_operand.vmem [shape: f32[32,32], index: 1, kind: input, shape index: {}]   ;;  %s1075_s2 = inlined_call_operand.vmem [shape: f32[3,32], index: 2, kind: input, shape index: {}]   ;;  %s1076_s3 = inlined_call_operand.vmem [shape: f32[512,32], index: 3, kind: input, shape index: {}]   ;;  %s1077_s4 = inlined_call_operand.vmem [shape: f32[1,512], index: 4, kind: input, shape index: {}]   ;;  %s1078_s5 = inlined_call_operand.hbm [shape: f32[16,512], index: 5, kind: output, shape index: {}]  }
   0x1   :  { %12 = vsyncpa [#allocation4 + $0x1], 0  ;;  %s860_s18 = smov 0   ;;  %s862_s19 = smov 0  }
   0x2   :  { %s864_s20 = smov 0   ;;  %s866_s21 = smov 0  }
   0x3   :  { %s868_s22 = smov 0   ;;  %s870_s23 = smov 0  }
   0x4   :  { %s872_s24 = smov 0   ;;  %s874_s25 = smov 0  }
   0x5 LB: > { %1084 = sst [smem:[#allocation6_spill]] %s818_s23  ;;  %s609_s26 = sadd.s32 4294967295, %s826_s25   ;;  %s826_s25 = sphi %s874_s25, %s18_s25   ;;  %s822_s24 = sphi %s872_s24, %s1094_s24   ;;  %s818_s23 = sphi %s870_s23, %s1093_s23   ;;  %s814_s22 = sphi %s868_s22, %s1092_s22   ;;  %s810_s21 = sphi %s866_s21, %s1091_s21   ;;  %s806_s20 = sphi %s864_s20, %s1097_s20   ;;  %s802_s19 = sphi %s862_s19, %s1096_s19   ;;  %s798_s18 = sphi %s860_s18, %s1095_s18  }
   0x6   : > { %1085 = sst [smem:[#allocation7_spill]] %s822_s24  ;;  %s610_s27 = sadd.s32 4294967294, %s826_s25  }
   0x7   : > { %s27_s28 = sadd.s32 1, %s818_s23  ;;  %s30_s29 = sadd.s32 1, %s822_s24 }
   0x8   : > { %p28_p0 = scmp.ge.s32.totalorder %s27_s28, 4  ;;  %p169_p1 = scmp.ne.s32.totalorder %s806_s20, %s802_s19 }
   0x9   : > { %p170_p2 = scmp.eq.s32.totalorder %s609_s26, 7  ;;  %p175_p5 = scmp.ne.s32.totalorder %s802_s19, %s798_s18 }
   0xa   : > { %s1099_s28 = smov (%p28_p0, %s27_s28), 0  ;;  %s1101_s29 = smov (!%p28_p0, %s30_s29), %s822_s24 }
   0xb   : > { %1086 = sst [smem:[#allocation8_spill]] %s1099_s28  ;;  %s155_s30 = ssub.s32 %s818_s23, %s1099_s28 }
   0xc   : > { %p911_p3 = por %p170_p2, %p169_p1  ;;  %p32_p4 = scmp.ge.s32.totalorder %s1101_s29, 2 }
   0xd   : > { %p176_p6 = scmp.eq.s32.totalorder %s610_s27, 7  ;;  %p613_p7 = scmp.ge.s32.totalorder %s826_s25, 1 }
   0xe   : > { %s1103_s29 = smov (%p32_p4, %s1101_s29), 0  ;;  %p222_p9 = scmp.lt.s32.totalorder %s826_s25, 9 }
   0xf   : > { %1088 = sst [smem:[#allocation9_spill]] %s1103_s29  ;;  %p920_p8 = por %p176_p6, %p175_p5 }
  0x10   : > { %s154_s8 = ssub.s32 %s822_s24, %s1103_s29  ;;  %s159_s9 = sadd.s32 1, %s806_s20 }
  0x11   : > { %s156_s10 = sor.u32 %s155_s30, %s154_s8  ;;  %p223_p10 = pnand %p613_p7, %p222_p9 }
  0x12   : > { %p157_p11 = scmp.eq.s32.totalorder %s156_s10, 0  ;;  %s1080_s12 = sand.u32 (!%p223_p10), 1, %s802_s19  }
  0x13   : > { %226 = sbr.rel (%p223_p10) target bundleno = 691 (0x2b3), region = 40  ;;  %p257_p12 = scmp.lt.s32.totalorder (!%p223_p10), %s814_s22, 1 }
  0x14   : > { %s929_s11 = scalar_select %p157_p11, %s806_s20, %s159_s9  }
  0x15   : > { %s935_s13 = sshll.u32 (!%p223_p10), %s1080_s12, 3  ;;  %s616_s14 = sshll.u32 (!%p223_p10), %s810_s21, 4 }
  0x16   : > { %p262_p13 = scmp.lt.s32.totalorder (!%p223_p10), %s616_s14, 63  ;;  %p267_p0 = scmp.lt.s32.totalorder (!%p223_p10), %s810_s21, 3 }
  0x17   : > { %s256_s23 = scalar_lea.vmem (!%p223_p10), [#allocation3], %s935_s13  ;;  %p618_p1 = scmp.ne.s32.totalorder (!%p223_p10), %s810_s21, 0 }
  0x18   : > { %s258_s15 = scalar_select %p257_p12, %s814_s22, 1 }
  0x19   : > { %s1105_s14 = smov (!%p262_p13, %s616_s14), 63 }
  0x1a   : > { %s615_s16 = sshll.u32 %s258_s15, 3  ;;  %s617_s30 = sshll.u32 %s1105_s14, 3 }
  0x1b   : > { %s260_s27 = scalar_lea.vmem %s1073_s0, %s615_s16  ;;  %s946_s10 = scalar_lea.vmem %s1076_s3, %s617_s30 }
  0x1c   : > { %s949_s29 = scalar_select %p267_p0, %s810_s21, 3 }
  0x1d   : > { %273 = sbr.rel (%p618_p1) target bundleno = 496 (0x1f0), region = 44 }
  0x1e   : > { %s269_s24 = scalar_lea.vmem %s1077_s4, %s949_s29 }
  0x22   : > { %v281_v0 = vld [vmem:[%s1074_s1 + $0x18] sm:$0xff]  ;;  %vm283_vm0 = vcmask 261120   ;;  %v280_v1 = vld [vmem:[%s1074_s1 + $0x10] sm:$0xff]  ;;  %v279_v2 = vld [vmem:[%s1074_s1 + $0x8] sm:$0xff]  ;;  %v828_v5 = vmov 1.4142135  }
  0x23   : > { %619 = vmatpush.xpose.msk.msra.mxu0 %vm283_vm0, %v281_v0  ;;  %v278_v3 = vld [vmem:[%s1074_s1] sm:$0xff]  ;;  %723 = vrcp.f32 %v828_v5  ;;  %v829_v55 = vmov 32.0  }
  0x24   : > { %v277_v4 = vld [vmem:[%s260_s27] sm:$0xff] }
  0x25   : > { %v720_v11 = vld [vmem:[%s1075_s2] ss:$0 sm:$0xff] }
  0x27   : > { %620 = vmatpush.xpose.msk.msra.mxu0 %vm283_vm0, %v280_v1 }
  0x29   : > { %v724_v6 = vpop.eup %723 }
  0x2a   : > { %v321_v7 = vmul.f32 1.4142135, %v724_v6  ;;  %vm325_vm1 = vweird.f32 %v724_v6 }
  0x2b   : > { %621 = vmatpush.xpose.msk.msra.mxu0 %vm283_vm0, %v279_v2 }
  0x2c   : > { %v322_v8 = vsub.f32 1.0, %v321_v7 }
  0x2e   : > { %v323_v9 = vmul.f32 %v724_v6, %v322_v8 }
  0x2f   : > { %622 = vmatpush.xpose.msk.msra.mxu0 %vm283_vm0, %v278_v3 }
  0x30   : > { %v324_v10 = vadd.f32 %v724_v6, %v323_v9 }
  0x32   : > { %623 = vmatmul.msk.f32.vlgmr.msra.gmra.mxu0 %vm283_vm0, %v277_v4  ;;  %v326_v13 = vsel %vm325_vm1, %v724_v6, %v324_v10  ;;  %v721_v10 = vld [vmem:[%s1075_s2 + $0x1] ss:$0 sm:$0xff] }
  0xaf   : > { %v316_v12 = vpop.f32.mrf.mxu0 }
  0xb0   : > { %v317_v14 = vadd.f32 %v720_v11, %v316_v12 }
  0xb2   : > { %v327_v15 = vmul.f32 %v326_v13, %v317_v14  ;;  %v319_v51 = vmul.f32 0.5, %v317_v14  ;;  %v722_v14 = vld [vmem:[%s1075_s2 + $0x2] ss:$0 sm:$0xff] }
  0xb4   : > { %v328_v16 = vmul.f32 %v327_v15, %v327_v15 }
  0xb6   : > { %v329_v17 = vmin.f32 %v328_v16, 16.0 }
  0xb8   : > { %v330_v18 = vmul.f32 2.1237322e-06, %v329_v17  ;;  %v341_v19 = vmul.f32 3.8918573e-05, %v329_v17 }
  0xba   : > { %v331_v20 = vadd.f32 0.00028619796, %v330_v18  ;;  %v342_v21 = vadd.f32 0.001143296, %v341_v19 }
  0xbc   : > { %v332_v22 = vmul.f32 %v331_v20, %v329_v17  ;;  %v343_v23 = vmul.f32 %v342_v21, %v329_v17 }
  0xbe   : > { %v344_v24 = vadd.f32 0.014752088, %v343_v23  ;;  %v333_v25 = vadd.f32 0.0036580483, %v332_v22 }
  0xc0   : > { %v345_v26 = vmul.f32 %v344_v24, %v329_v17  ;;  %v334_v28 = vmul.f32 %v333_v25, %v329_v17 }
  0xc2   : > { %v346_v27 = vadd.f32 0.112945676, %v345_v26  ;;  %v335_v31 = vadd.f32 0.05243302, %v334_v28 }
  0xc4   : > { %v347_v29 = vmul.f32 %v346_v27, %v329_v17  ;;  %v336_v34 = vmul.f32 %v335_v31, %v329_v17 }
  0xc6   : > { %v348_v30 = vadd.f32 0.4994258, %v347_v29  ;;  %v337_v35 = vadd.f32 0.18741608, %v336_v34 }
  0xc8   : > { %v349_v32 = vmul.f32 %v348_v30, %v329_v17  ;;  %v338_v37 = vmul.f32 %v337_v35, %v329_v17 }
  0xca   : > { %v350_v33 = vadd.f32 1.0, %v349_v32  ;;  %v339_v41 = vadd.f32 1.1283791, %v338_v37 }
  0xcc   : > { %725 = vrcp.f32 %v350_v33  ;;  %v362_v40 = vand.u32 2147483648, %v350_v33  ;;  %v360_v43 = vand.u32 2147483647, %v350_v33  ;;  %vm356_vm3 = vweird.f32 %v350_v33 }
  0xcd   : > { %v340_v46 = vmul.f32 %v339_v41, %v327_v15  ;;  %727 = vrcp.f32 %v829_v55 }
  0xce   : > { %v363_v45 = vor.u32 1.1754944e-38, %v362_v40  ;;  %vm361_vm5 = vcmp.eq.f32.partialorder %v360_v43, 8.507059e+37 }
  0xd2   : > { %v726_v36 = vpop.eup %725 }
  0xd3   : > { %v352_v38 = vmul.f32 %v726_v36, %v350_v33  ;;  %vm357_vm2 = vweird.f32 %v726_v36  ;;  %v728_v56 = vpop.eup %727 }
  0xd4   : > { %vm358_vm4 = vmor %vm356_vm3, %vm357_vm2  ;;  %v374_v57 = vmul.f32 32.0, %v728_v56  ;;  %vm378_vm6 = vweird.f32 %v728_v56 }
  0xd5   : > { %v353_v39 = vsub.f32 1.0, %v352_v38 }
  0xd6   : > { %v375_v58 = vsub.f32 1.0, %v374_v57 }
  0xd7   : > { %v354_v42 = vmul.f32 %v726_v36, %v353_v39 }
  0xd8   : > { %v376_v59 = vmul.f32 %v728_v56, %v375_v58 }
  0xd9   : > { %v355_v44 = vadd.f32 %v726_v36, %v354_v42 }
  0xda   : > { %v377_v60 = vadd.f32 %v728_v56, %v376_v59 }
  0xdb   : > { %v359_v47 = vsel %vm358_vm4, %v726_v36, %v355_v44 }
  0xdc   : > { %v364_v48 = vsel %vm361_vm5, %v363_v45, %v359_v47  ;;  %v379_v61 = vsel %vm378_vm6, %v728_v56, %v377_v60 }
  0xdd   : > { %v365_v49 = vmul.f32 %v364_v48, %v340_v46 }
  0xdf   : > { %v624_v50 = vclamps-f32 %v365_v49, 1.0 }
  0xe1   : > { %v368_v52 = vadd.f32 1.0, %v624_v50 }
  0xe3   : > { %v369_v53 = vmul.f32 %v368_v52, %v319_v51 }
  0xe5   : > { %v370_v54 = vsel %vm283_vm0, %v369_v53, 0.0 }
  0xe6   : > { %371 = vadd.xlane.f32.xlu0 %v370_v54 }
 0x159   : > { %v372_v62 = vpop.xlane.xlu0 %371 }
 0x15a   : > { %v380_v63 = vmul.f32 %v379_v61, %v372_v62 }
 0x15c   : > { %v381_v0 = vsub.f32 %v369_v53, %v380_v63 }
 0x15e   : > { %v382_v1 = vmul.f32 %v381_v0, %v381_v0  ;;  %v388_v13 = vmul.f32 %v721_v10, %v381_v0 }
 0x160   : > { %v383_v2 = vsel %vm283_vm0, %v382_v1, 0.0 }
 0x161   : > { %384 = vadd.xlane.f32.xlu0 %v383_v2 }
 0x1d4   : > { %v385_v3 = vpop.xlane.xlu0 %384 }
 0x1d5   : > { %v386_v4 = vmul.f32 %v385_v3, %v379_v61 }
 0x1d7   : > { %v389_v5 = vadd.f32 1e-05, %v386_v4 }
 0x1d9   : > { %729 = vrsqrt.f32 %v389_v5  ;;  %vm396_vm8 = vweird.f32 %v389_v5 }
 0x1df   : > { %v730_v6 = vpop.eup %729 }
 0x1e0   : > { %v391_v7 = vmul.f32 %v730_v6, %v389_v5  ;;  %vm397_vm7 = vweird.f32 %v730_v6 }
 0x1e1   : > { %vm398_vm9 = vmor %vm396_vm8, %vm397_vm7 }
 0x1e2   : > { %v392_v8 = vmul.f32 %v730_v6, %v391_v7 }
 0x1e4   : > { %v393_v9 = vmul.f32 0.5, %v392_v8 }
 0x1e6   : > { %v394_v11 = vsub.f32 1.5, %v393_v9 }
 0x1e8   : > { %v395_v12 = vmul.f32 %v730_v6, %v394_v11 }
 0x1ea   : > { %v399_v15 = vsel %vm398_vm9, %v730_v6, %v395_v12 }
 0x1eb   : > { %v400_v16 = vmul.f32 %v399_v15, %v388_v13 }
 0x1ed   : > { %v402_v17 = vadd.f32 %v722_v14, %v400_v16 }
 0x1ef   : > { %403 = vst.msk [vmem:[#allocation2] sm:$0xff] %vm283_vm0, %v402_v17 }
 0x1f0 PF: > { %v420_v18 = vld [vmem:[%s946_s10 + $0x78] sm:$0xff]  ;;  %vm425_vm10 = vcmask 261120   ;;  %v419_v19 = vld [vmem:[%s946_s10 + $0x70] sm:$0xff]  ;;  %v418_v20 = vld [vmem:[%s946_s10 + $0x68] sm:$0xff]  ;;  %s643_s16 = sshll.u32 %s814_s22, 2 }
 0x1f1   : > { %625 = vmatpush.xpose.msk.msra.mxu0 %vm425_vm10, %v420_v18  ;;  %v417_v21 = vld [vmem:[%s946_s10 + $0x60] sm:$0xff]  ;;  %v416_v22 = vld [vmem:[%s946_s10 + $0x58] sm:$0xff]  ;;  %v415_v23 = vld [vmem:[%s946_s10 + $0x50] sm:$0xff]  ;;  %s509_s26 = sadd.s32 %s810_s21, %s643_s16  ;;  %s1090_s21 = sand.u32 1, %s802_s19  }
 0x1f2   : > { %v414_v24 = vld [vmem:[%s946_s10 + $0x48] sm:$0xff]  ;;  %v413_v25 = vld [vmem:[%s946_s10 + $0x40] sm:$0xff]  ;;  %v412_v26 = vld [vmem:[%s946_s10 + $0x38] sm:$0xff]  ;;  %s644_s28 = sshll.u32 %s509_s26, 3  ;;  %s499_s22 = scalar_lea.sflag [#allocation4], %s1090_s21 }
 0x1f3   : > { %v411_v27 = vld [vmem:[%s946_s10 + $0x30] sm:$0xff]  ;;  %v410_v28 = vld [vmem:[%s946_s10 + $0x28] sm:$0xff]  ;;  %v409_v29 = vld [vmem:[%s946_s10 + $0x20] sm:$0xff]  ;;  %s511_s8 = scalar_lea.hbm %s1078_s5, %s644_s28  ;;  %s752_s16 = scalar_lea.hbm %s1078_s5, 64 }
 0x1f4   : > { %v408_v30 = vld [vmem:[%s946_s10 + $0x18] sm:$0xff]  ;;  %v407_v31 = vld [vmem:[%s946_s10 + $0x10] sm:$0xff]  ;;  %v406_v32 = vld [vmem:[%s946_s10 + $0x8] sm:$0xff]  ;;  %s515_s15 = sshll.u32 %s511_s8, 4  ;;  %s516_s15 = int_to_ptr.hbm [resolvable:$true] %s515_s15 }
 0x1f5   : > { %626 = vmatpush.xpose.msk.msra.mxu0 %vm425_vm10, %v419_v19  ;;  %v405_v33 = vld [vmem:[%s946_s10] sm:$0xff]  ;;  %s513_s10 = sshll.u32 %s256_s23, 4  ;;  %s746_s17 = sshra.s32 %s516_s15, 4  ;;  %s514_s10 = int_to_ptr.vmem [resolvable:$true] %s513_s10  ;;  %s747_s17 = int_to_ptr.hbm [resolvable:$true] %s746_s17 }
 0x1f6   : > { %v404_v34 = vld [vmem:[#allocation2] sm:$0xff]  ;;  %s748_s14 = scalar_lea.hbm %s747_s17, 8  ;;  %p753_p6 = scmp.lt.s32.totalorder %s747_s17, %s1078_s5 }
 0x1f7   : > { %v731_v35 = vld [vmem:[%s269_s24] ss:$0 sm:$0xff]  ;;  %p749_p2 = scmp.ne.s32.totalorder %s747_s17, %s748_s14  ;;  %p754_p7 = scmp.lt.s32.totalorder %s752_s16, %s748_s14 }
 0x1f9   : > { %627 = vmatpush.xpose.msk.msra.mxu0 %vm425_vm10, %v418_v20  ;;  %p750_p4 = pnand %p749_p2, %p911_p3  ;;  %p755_p9 = por %p754_p7, %p753_p6 }
 0x1fb   : > { %p751_p5 = pneg %p750_p4 }
 0x1fd   : > { %628 = vmatpush.xpose.msk.msra.mxu0 %vm425_vm10, %v417_v21  ;;  %p756_p10 = pnand %p755_p9, %p751_p5 }
 0x201   : > { %629 = vmatpush.xpose.msk.msra.mxu0 %vm425_vm10, %v416_v22 }
 0x205   : > { %630 = vmatpush.xpose.msk.msra.mxu0 %vm425_vm10, %v415_v23 }
 0x209   : > { %631 = vmatpush.xpose.msk.msra.mxu0 %vm425_vm10, %v414_v24 }
 0x20d   : > { %632 = vmatpush.xpose.msk.msra.mxu0 %vm425_vm10, %v413_v25 }
 0x211   : > { %633 = vmatpush.xpose.msk.msra.mxu0 %vm425_vm10, %v412_v26 }
 0x215   : > { %634 = vmatpush.xpose.msk.msra.mxu0 %vm425_vm10, %v411_v27 }
 0x219   : > { %635 = vmatpush.xpose.msk.msra.mxu0 %vm425_vm10, %v410_v28 }
 0x21d   : > { %636 = vmatpush.xpose.msk.msra.mxu0 %vm425_vm10, %v409_v29 }
 0x221   : > { %637 = vmatpush.xpose.msk.msra.mxu0 %vm425_vm10, %v408_v30 }
 0x225   : > { %638 = vmatpush.xpose.msk.msra.mxu0 %vm425_vm10, %v407_v31 }
 0x229   : > { %639 = vmatpush.xpose.msk.msra.mxu0 %vm425_vm10, %v406_v32 }
 0x22d   : > { %640 = vmatpush.xpose.msk.msra.mxu0 %vm425_vm10, %v405_v33 }
 0x230   : > { %641 = vmatmul.msk.f32.vlgmr.msra.gmra.mxu0 %vm425_vm10, %v404_v34 }
 0x2ad   : > { %v494_v36 = vpop.f32.mrf.mxu0 }
 0x2ae   : > { %v495_v37 = vadd.f32 %v731_v35, %v494_v36 }
 0x2b0   : > { %497 = vst [vmem:[%s256_s23] sm:$0xff] %v495_v37 }
 0x2b1   : > { %759 = shalt.err (!%p756_p10)
}
 0x2b2   : > { %647 = dma.vmem_to_hbm [thread:$0]  (%p911_p3), %s514_s10, 128, %s516_s15, %s499_s22  }
 0x2b3 PF: > { %p653_p11 = scmp.ge.s32.totalorder %s826_s25, 2  ;;  %s527_s23 = sand.u32 1, %s798_s18  }
 0x2b4   : > { %s528_s13 = scalar_lea.sflag [#allocation4], %s527_s23 }
 0x2b5   : > { %p650_p12 = pnand %p653_p11, %p920_p8 }
 0x2b7   : > { %p651_p13 = pneg %p650_p12 }
 0x2b9   : > { %793 = dma.done.wait (%p651_p13), %s528_s13, 128  }
 0x2ba   : > { %795 = vsyncadd (%p651_p13), %s528_s13, 4294967168  ;;  %s18_s25 = sadd.s32 1, %s826_s25   ;;  %s1091_s21 = sld [smem:[#allocation6_spill]] }
 0x2bb   : > { %p15_p0 = scmp.ge.s32.totalorder %s18_s25, 10   ;;  %s1092_s22 = sld [smem:[#allocation7_spill]] }
 0x2bc   : > { %s1093_s23 = sld [smem:[#allocation8_spill]]  ;;  %s1095_s18 = smov %s802_s19 }
 0x2bd   : > { %s1094_s24 = sld [smem:[#allocation9_spill]]  ;;  %s1096_s19 = smov %s806_s20 }
 0x2be   : > { %s1097_s20 = smov %s929_s11  ;;  %17 = sbr.rel (!%p15_p0) target bundleno = 5 (0x5), region = 85 }
 0x2c3   :  { %534 = vsyncpa [#allocation4], 1 }
 0x2c4   :  { %536 = vsyncpa [#allocation4 + $0x1], 1 }

</bundles_post_ra>
